<compile_context>
chip_gen: v7x
topology: tpu7x:2x2x1
jax: 0.10.0
libtpu: 0.0.40
codegen_flags: <defaults>
</compile_context>

<pallas_src>
import functools

import jax
import jax.numpy as jnp
from jax.experimental import pallas as pl
from jax.experimental.pallas import tpu as pltpu

N_DROPOUTS = 5  # eval-mode Dropout is identity -> the 5-way average is exact identity


def effnet_head_kernel(feat_ref, w_ref, b_ref, out_ref):
    # out = mean_i myfc(dropout_i(feat)) == feat @ W + b  (eval mode, exact)
    acc = jnp.dot(feat_ref[...], w_ref[...], preferred_element_type=jnp.float32)
    out_ref[...] = acc + b_ref[...]


def _round_up(x, m):
    return (x + m - 1) // m * m


def pad_head_params(w, b, param_dtype=jnp.float32):
    """Zero-pad the classifier to a lane-dense (multiple-of-128) output dim.

    Call ONCE at model-load time (hoisted out of the per-forward path per the
    perf review). Inside the kernel the padded weights are VMEM-resident via a
    constant index_map, so per-step weight traffic is nil.
    """
    in_ch, out_dim = w.shape
    out_p = _round_up(max(out_dim, 128), 128)
    w_p = jnp.zeros((in_ch, out_p), param_dtype).at[:, :out_dim].set(
        w.astype(param_dtype))
    b_p = jnp.zeros((1, out_p), jnp.float32).at[:, :out_dim].set(
        b.reshape(1, out_dim).astype(jnp.float32))
    return w_p, b_p


@functools.partial(jax.jit, static_argnames=("out_dim", "block_b"))
def effnet_head_forward(feat, w_p, b_p, *, out_dim, block_b=1024):
    """feat: (B, in_ch) backbone features (pass bf16 features directly for the
    halved-traffic path), w_p/b_p: outputs of pad_head_params."""
    B, F = feat.shape
    out_p = w_p.shape[-1]

    feat_isz = jnp.dtype(feat.dtype).itemsize
    w_isz = jnp.dtype(w_p.dtype).itemsize
    sublane = max(8, 32 // feat_isz)  # 8 for f32, 16 for bf16

    # Batch tile: as large as block_b allows, but split into >=2 grid steps
    # whenever B is big enough so ("parallel",) can shard both v7x TensorCores
    # (one extra ~0.35us grid step is noise on single-TC v5e/v6e).
    half_b = -(-B // 2)
    tb = min(block_b, _round_up(max(half_b, 1), sublane))
    tb = max(tb, sublane)

    # VMEM budget: explicit headroom under v7x's 64 MiB physical VMEM; the
    # explicit limit below also lifts v5e's 16 MiB default scoped limit.
    def vmem_need(t):
        return (2 * t * F * feat_isz        # double-buffered feat stream
                + 2 * F * out_p * w_isz     # weights (budget two buffers)
                + 2 * out_p * 4             # bias
                + 2 * t * out_p * 4)        # double-buffered output tile

    budget = 44 << 20
    while tb > sublane and vmem_need(tb) > budget:
        tb = max(sublane, _round_up(tb // 2, sublane))

    grid = (pl.cdiv(B, tb),)
    vmem_limit = min(max(vmem_need(tb) + (4 << 20), 32 << 20), 48 << 20)

    out = pl.pallas_call(
        effnet_head_kernel,
        out_shape=jax.ShapeDtypeStruct((B, out_p), jnp.float32),
        grid=grid,
        in_specs=[
            # batch-tiled feature stream, straight from the caller (no pad copy);
            # the ragged last block reads garbage rows that are masked on store
            pl.BlockSpec((tb, F), lambda i: (i, 0)),
            # weights/bias: constant block index -> stay resident in VMEM
            pl.BlockSpec((F, out_p), lambda i: (0, 0)),
            pl.BlockSpec((1, out_p), lambda i: (0, 0)),
        ],
        out_specs=pl.BlockSpec((tb, out_p), lambda i: (i, 0)),
        compiler_params=pltpu.CompilerParams(
            dimension_semantics=("parallel",),
            vmem_limit_bytes=vmem_limit),
    )(feat, w_p, b_p)

    # Slice away only the lane padding of the classifier dim.
    return out[:, :out_dim]


def reference_forward(feat, w, b):
    """Pure-JAX reference reproducing the PyTorch loop faithfully (eval mode)."""
    out = jnp.zeros((feat.shape[0], w.shape[1]), jnp.float32)
    for _ in range(N_DROPOUTS):
        out = out + (feat @ w + b.reshape(1, -1))
    return out / N_DROPOUTS


if __name__ == "__main__":
    # Small shapes consistent with the module:
    #   in_ch (backbone feature dim, stand-in for ~1536/2048) = 64
    #   out_dim = 9 (melanoma classifier), batch = 2
    B, IN_CH, OUT_DIM = 2, 64, 9

    key = jax.random.PRNGKey(0)
    k_feat, k_w, k_b = jax.random.split(key, 3)
    feat = jax.random.normal(k_feat, (B, IN_CH), jnp.float32)   # enet(x) features
    w = jax.random.normal(k_w, (IN_CH, OUT_DIM), jnp.float32) * 0.05
    b = jax.random.normal(k_b, (OUT_DIM,), jnp.float32) * 0.05

    ref = reference_forward(feat, w, b)

    # f32 path (exact check). Weight padding happens once, at "model load".
    w_p, b_p = pad_head_params(w, b, jnp.float32)
    out = jax.block_until_ready(
        effnet_head_forward(feat, w_p, b_p, out_dim=OUT_DIM))
    assert out.shape == (B, OUT_DIM)
    assert jnp.allclose(out, ref, atol=1e-4, rtol=1e-4)

    # bf16-at-source path: in production the backbone emits bf16 pooled features
    # directly; the cast below only simulates that for the test (it is NOT part
    # of the forward wrapper). f32 accumulation via preferred_element_type.
    w_p16, b_p16 = pad_head_params(w, b, jnp.bfloat16)
    feat_bf16 = feat.astype(jnp.bfloat16)
    out_bf16 = jax.block_until_ready(
        effnet_head_forward(feat_bf16, w_p16, b_p16, out_dim=OUT_DIM))
    assert out_bf16.shape == (B, OUT_DIM)
    assert jnp.allclose(out_bf16, ref, atol=5e-2, rtol=5e-2)

    print("KERNEL_OK")
</pallas_src>

<mosaic_0001>
module attributes {stable_mosaic.version = 11 : i64} {
  func.func @effnet_head_kernel(%arg0: i32, %arg1: memref<8x64xf32, #tpu.memory_space<vmem>>, %arg2: memref<64x128xf32, #tpu.memory_space<vmem>>, %arg3: memref<1x128xf32, #tpu.memory_space<vmem>>, %arg4: memref<8x128xf32, #tpu.memory_space<vmem>>) attributes {dimension_semantics = [#tpu.dimension_semantics<parallel>], iteration_bounds = array<i64: 1>, scalar_prefetch = 0 : i64, scratch_operands = 0 : i64, tpu.core_type = #tpu.core_type<tc>, window_params = [{transform_indices = @transform_0, window_bounds = array<i64: 8, 64>}, {pipeline_mode = #tpu.pipeline_mode<synchronous>, transform_indices = @transform_1, window_bounds = array<i64: 64, 128>}, {pipeline_mode = #tpu.pipeline_mode<synchronous>, transform_indices = @transform_2, window_bounds = array<i64: 1, 128>}, {transform_indices = @transform_3, window_bounds = array<i64: 8, 128>}]} {
    %c0 = arith.constant 0 : index
    %c0_0 = arith.constant 0 : index
    %0 = vector.load %arg1[%c0, %c0_0] : memref<8x64xf32, #tpu.memory_space<vmem>>, vector<8x64xf32>
    %c0_1 = arith.constant 0 : index
    %c0_2 = arith.constant 0 : index
    %1 = vector.load %arg2[%c0_1, %c0_2] : memref<64x128xf32, #tpu.memory_space<vmem>>, vector<64x128xf32>
    %cst = arith.constant dense<0.000000e+00> : vector<8x128xf32>
    %2 = tpu.matmul %0, %1, %cst {dimension_numbers = #tpu.dot_dimension_numbers<[1], [0], [0], [1], [0, 0, 1, 1], [], []>} : vector<8x64xf32>, vector<64x128xf32>, vector<8x128xf32> -> vector<8x128xf32>
    %c0_3 = arith.constant 0 : index
    %c0_4 = arith.constant 0 : index
    %3 = vector.load %arg3[%c0_3, %c0_4] : memref<1x128xf32, #tpu.memory_space<vmem>>, vector<1x128xf32>
    %4 = vector.broadcast %3 : vector<1x128xf32> to vector<8x128xf32>
    %5 = arith.addf %2, %4 : vector<8x128xf32>
    %c0_5 = arith.constant 0 : index
    %c0_6 = arith.constant 0 : index
    %6 = vector.load %arg4[%c0_5, %c0_6] : memref<8x128xf32, #tpu.memory_space<vmem>>, vector<8x128xf32>
    tpu.vector_store %arg4[%c0_5, %c0_6], %5 {strides = array<i32>} : memref<8x128xf32, #tpu.memory_space<vmem>>, vector<8x128xf32>,
    return
  }
  func.func @transform_0(%arg0: i32) -> (i32, i32) {
    %c0_i32 = arith.constant 0 : i32
    %c0_i32_0 = arith.constant 0 : i32
    return %arg0, %c0_i32 : i32, i32
  }
  func.func @transform_1(%arg0: i32) -> (i32, i32) {
    %c0_i32 = arith.constant 0 : i32
    %c0_i32_0 = arith.constant 0 : i32
    %c0_i32_1 = arith.constant 0 : i32
    return %c0_i32, %c0_i32_0 : i32, i32
  }
  func.func @transform_2(%arg0: i32) -> (i32, i32) {
    %c0_i32 = arith.constant 0 : i32
    %c0_i32_0 = arith.constant 0 : i32
    %c0_i32_1 = arith.constant 0 : i32
    return %c0_i32, %c0_i32_0 : i32, i32
  }
  func.func @transform_3(%arg0: i32) -> (i32, i32) {
    %c0_i32 = arith.constant 0 : i32
    %c0_i32_0 = arith.constant 0 : i32
    return %arg0, %c0_i32 : i32, i32
  }
}

</mosaic_0001>

<bundles_post_ra>
// kernel: effnet_head_forward.1
= control target key start
LH: loop header
LB: loop body
LE: loop exit
PB: predicated region body
PF: predicated region fallthrough
CT: control target
= control target key end

     0   :  { %8 = vsyncpa [#allocation3], 0  ;;  %s351_s0 = inlined_call_operand.hbm [shape: f32[2,64], index: 0, kind: input, shape index: {}]   ;;  %s352_s1 = inlined_call_operand.hbm [shape: f32[64,128], index: 1, kind: input, shape index: {}]   ;;  %s353_s2 = inlined_call_operand.vmem [shape: f32[1,128], index: 2, kind: input, shape index: {}]   ;;  %s354_s3 = inlined_call_operand.hbm [shape: f32[2,128], index: 3, kind: output, shape index: {}]  }
   0x1   :  { %9 = vsyncpa [#allocation6], 0 }
   0x2   :  { %10 = vsyncpa [#allocation4], 0 }
   0x3   :  { %15 = vsyncadd [#allocation3], 96  ;;  %s276_s12 = smov [#allocation2]   ;;  %s204_s16 = scalar_lea.hbm %s351_s0, 32 }
   0x4   :  { %s16_s13 = sshll.u32 %s276_s12, 4  ;;  %p205_p0 = scmp.ne.s32.totalorder %s351_s0, %s204_s16  ;;  %s17_s13 = int_to_ptr.vmem [resolvable:$true] %s16_s13 }
   0x5   :  { %p208_p1 = scmp.lt.u32.totalorder %s204_s16, %s351_s0 }
   0x7   :  { %p210_p2 = pnand %p208_p1, %p205_p0 }
   0x9   :  { %213 = shalt.err (!%p210_p2)
}
   0xa   :  { %s214_s21 = scalar_lea.vmem %s17_s13, 32  ;;  %s218_s22 = scalar_lea.vmem %s17_s13, 128 }
   0xb   :  { %p215_p3 = scmp.ne.s32.totalorder %s17_s13, %s214_s21  ;;  %p219_p4 = scmp.lt.s32.totalorder %s17_s13, %s17_s13 }
   0xc   :  { %p220_p5 = scmp.lt.s32.totalorder %s218_s22, %s214_s21 }
   0xe   :  { %p221_p6 = por %p220_p5, %p219_p4 }
  0x10   :  { %p222_p7 = pnand %p221_p6, %p215_p3 }
  0x12   :  { %225 = shalt.err (!%p222_p7)
}
  0x13   :  { %s277_s23 = smov 32   ;;  %s278_s24 = smov 2  }
  0x14   :  { %22 = dma.hbm_to_vmem [thread:$0]  %s351_s0, 32, %s17_s13, [#allocation3], %s277_s23, %s277_s23, %s278_s24  }
  0x15   :  { %s279_s27 = smov [#allocation5]   ;;  %s226_s4 = scalar_lea.hbm %s352_s1, 1024 }
  0x16   :  { %s28_s28 = sshll.u32 %s279_s27, 4  ;;  %p227_p8 = scmp.ne.s32.totalorder %s352_s1, %s226_s4  ;;  %s29_s28 = int_to_ptr.vmem [resolvable:$true] %s28_s28 }
  0x17   :  { %p230_p9 = scmp.lt.u32.totalorder %s226_s4, %s352_s1 }
  0x19   :  { %p232_p10 = pnand %p230_p9, %p227_p8 }
  0x1b   :  { %235 = shalt.err (!%p232_p10)
}
  0x1c   :  { %s236_s9 = scalar_lea.vmem %s29_s28, 1024  ;;  %p241_p12 = scmp.lt.s32.totalorder %s29_s28, %s29_s28 }
  0x1d   :  { %p237_p11 = scmp.ne.s32.totalorder %s29_s28, %s236_s9  ;;  %p242_p13 = scmp.lt.s32.totalorder %s236_s9, %s236_s9 }
  0x1f   :  { %p243_p0 = por %p242_p13, %p241_p12 }
  0x21   :  { %p244_p1 = pnand %p243_p0, %p237_p11 }
  0x23   :  { %247 = shalt.err (!%p244_p1)
}
  0x24   :  { %s280_s0 = smov 128   ;;  %s281_s10 = smov 8  }
  0x25   :  { %34 = dma.hbm_to_vmem [thread:$0]  %s352_s1, 1024, %s29_s28, [#allocation6], %s280_s0, %s280_s0, %s281_s10  }
  0x26   :  { %270 = dma.done.wait [#allocation3], 128  }
  0x27   :  { %271 = vsyncadd [#allocation3], 4294967168 }
  0x28   :  { %272 = dma.done.wait [#allocation6], 1024  }
  0x29   :  { %273 = vsyncadd [#allocation6], 4294966272  ;;  %v282_v0 = vmov 0.0|0.0   ;;  %vm283_vm0 = vmmov 0   ;;  %v284_v1 = vmov 0.0   ;;  %v44_v2 = vld [vmem:[#allocation5] sm:$0xff] }
  0x2a   :  { %182 = vmatprep.subr.bf16.mxu0 %v282_v0  ;;  %179 = vmatprep.mubr.msk.f32.mxu0 %vm283_vm0, %v284_v1  ;;  %v45_v3 = vld [vmem:[#allocation5 + $0x8] sm:$0xff]  ;;  %v46_v4 = vld [vmem:[#allocation5 + $0x10] sm:$0xff]  ;;  %v47_v6 = vld [vmem:[#allocation5 + $0x18] sm:$0xff]  ;;  %vm59_vm1 = vcmask 523264  }
  0x2b   :  { %v183_v5 = vpack.c.bf16 %v45_v3, %v44_v2  ;;  %v186_v7 = vpack.c.bf16 %v47_v6, %v46_v4  ;;  %v48_v8 = vld [vmem:[#allocation5 + $0x20] sm:$0xff]  ;;  %v49_v9 = vld [vmem:[#allocation5 + $0x28] sm:$0xff]  ;;  %v50_v11 = vld [vmem:[#allocation5 + $0x30] sm:$0xff] }
  0x2c   :  { %v189_v10 = vpack.c.bf16 %v49_v9, %v48_v8  ;;  %v51_v12 = vld [vmem:[#allocation5 + $0x38] sm:$0xff] }
  0x2d   :  { %184 = vmatpush3.bf16.msra.mxu0 %v183_v5  ;;  %v192_v13 = vpack.c.bf16 %v51_v12, %v50_v11  ;;  %v43_v14 = vld [vmem:[#allocation2] sm:$0xff] }
  0x2e   :  { %185 = vmatprep.subr.bf16.mxu0 %v282_v0  ;;  %v152_v15 = vld [vmem:[%s353_s2] ss:$0 sm:$0xff] }
  0x31   :  { %187 = vmatpush3.bf16.msra.mxu0 %v186_v7 }
  0x32   :  { %188 = vmatprep.subr.bf16.mxu0 %v282_v0 }
  0x35   :  { %190 = vmatpush3.bf16.msra.mxu0 %v189_v10 }
  0x36   :  { %191 = vmatprep.subr.bf16.mxu0 %v282_v0 }
  0x39   :  { %193 = vmatpush3.bf16.msra.mxu0 %v192_v13 }
  0x3c   :  { %180 = vmatmul.mubr.msk.f32.vlgmr.msra.gmra.mrb[0].mxu0 %vm59_vm1, %v43_v14 }
 0x10f   :  { %v129_v16 = vpop.f32.mrb[0].mxu0 }
 0x110   :  { %v130_v17 = vadd.f32 %v152_v15, %v129_v16  ;;  %v181_v18 = vpop.f32.mrb[1].mxu0 }
 0x112   :  { %133 = vst [vmem:[#allocation7] sm:$0xff] %v130_v17 }
 0x113   :  { %138 = vsyncadd [#allocation4], 96  ;;  %s285_s14 = smov [#allocation7]  }
 0x114   :  { %s139_s15 = sshll.u32 %s285_s14, 4  ;;  %s140_s15 = int_to_ptr.vmem [resolvable:$true] %s139_s15 }
 0x115   :  { %s248_s16 = scalar_lea.vmem %s140_s15, 32  ;;  %s252_s17 = scalar_lea.vmem %s140_s15, 128 }
 0x116   :  { %p249_p2 = scmp.ne.s32.totalorder %s140_s15, %s248_s16  ;;  %p253_p3 = scmp.lt.s32.totalorder %s140_s15, %s140_s15 }
 0x117   :  { %p254_p4 = scmp.lt.s32.totalorder %s252_s17, %s248_s16 }
 0x119   :  { %p255_p5 = por %p254_p4, %p253_p3 }
 0x11b   :  { %p256_p6 = pnand %p255_p5, %p249_p2 }
 0x11d   :  { %259 = shalt.err (!%p256_p6)
}
 0x11e   :  { %s260_s2 = scalar_lea.hbm %s354_s3, 32 }
 0x11f   :  { %p261_p7 = scmp.ne.s32.totalorder %s354_s3, %s260_s2  ;;  %p264_p8 = scmp.lt.u32.totalorder %s260_s2, %s354_s3 }
 0x121   :  { %p266_p9 = pnand %p264_p8, %p261_p7 }
 0x123   :  { %269 = shalt.err (!%p266_p9)
}
 0x124   :  { %145 = dma.vmem_to_hbm [thread:$0]  %s140_s15, 32, %s354_s3, [#allocation4], %s277_s23, %s277_s23, %s278_s24  }
 0x125   :  { %274 = dma.done.wait [#allocation4], 128  }
 0x126   :  { %275 = vsyncadd [#allocation4], 4294967168 }
 0x127   :  { %149 = vsyncpa [#allocation3], 1 }
 0x128   :  { %150 = vsyncpa [#allocation6], 1 }
 0x129   :  { %151 = vsyncpa [#allocation4], 1 }

</bundles_post_ra>
